<compile_context>
chip_gen: v7x
topology: tpu7x:2x2x1
jax: 0.10.0
libtpu: 0.0.40
codegen_flags: <defaults>
</compile_context>

<pallas_src>
from functools import partial

import jax
import jax.numpy as jnp
from jax.experimental import pallas as pl
from jax.experimental.pallas import tpu as pltpu


def _smooth_l1(d):
    ad = jnp.abs(d)
    return jnp.where(ad < 1.0, 0.5 * d * d, ad - 0.5)


def multibox_kernel(n_valid_ref, boxes_ref, stacked_ref, prior_ref, locs_ref,
                    scores_ref, out_ref, *, overlap_threshold):
    nv = n_valid_ref[pl.program_id(0)]          # per-image valid-object count (SMEM)

    boxes = boxes_ref[0]          # (Npad, 4)  corners (xmin, ymin, xmax, ymax)
    stacked = stacked_ref[0]      # (8, Npad)  rows [label, cx, cy, log w, log h, 0,0,0]
    pc = prior_ref[...]           # (16, P)
    locs_pc = locs_ref[0]         # (P, 4)  model layout, no wrapper transpose
    scores_pc = scores_ref[0]     # (P, C)  model layout, no wrapper transpose

    Np = boxes.shape[0]
    P = pc.shape[1]
    C = scores_pc.shape[1]

    # ---- transpose predictions to lane-dense (rows, P) on the (idle) MXU ----
    # eye @ X with the trailing dims contracted == X^T; avoids both the wrapper
    # HBM transpose round-trip and an in-kernel vector.transpose relayout.
    dn = (((1,), (1,)), ((), ()))
    eye_c = (jax.lax.broadcasted_iota(jnp.int32, (C, C), 0) ==
             jax.lax.broadcasted_iota(jnp.int32, (C, C), 1)).astype(jnp.float32)
    eye_4 = (jax.lax.broadcasted_iota(jnp.int32, (4, 4), 0) ==
             jax.lax.broadcasted_iota(jnp.int32, (4, 4), 1)).astype(jnp.float32)
    scores = jax.lax.dot_general(eye_c, scores_pc, dn,
                                 preferred_element_type=jnp.float32)      # (C, P)
    pred_locs = jax.lax.dot_general(eye_4, locs_pc, dn,
                                    preferred_element_type=jnp.float32)   # (4, P)

    bx0 = boxes[:, 0:1]; by0 = boxes[:, 1:2]; bx1 = boxes[:, 2:3]; by1 = boxes[:, 3:4]
    px0 = pc[0:1]; py0 = pc[1:2]; px1 = pc[2:3]; py1 = pc[3:4]; area_p = pc[4:5]

    # ---- IoU matrix (Npad, P) ----
    ix = jnp.maximum(jnp.minimum(bx1, px1) - jnp.maximum(bx0, px0), 0.0)
    iy = jnp.maximum(jnp.minimum(by1, py1) - jnp.maximum(by0, py0), 0.0)
    inter = ix * iy
    area_b = (bx1 - bx0) * (by1 - by0)
    # Exact divide kept intentionally: approx EUP reciprocal could flip priors
    # sitting exactly at the overlap threshold relative to the reference.
    iou = inter / (area_b + area_p - inter)

    obj_ids = jax.lax.broadcasted_iota(jnp.int32, (Np, 1), 0)    # (Npad, 1)
    prior_ids = jax.lax.broadcasted_iota(jnp.int32, (1, P), 1)   # (1, P)

    valid = obj_ids < nv                                         # (Npad, 1)
    iou = jnp.where(valid, iou, -1.0)                            # mask padded objects

    # max / first-occurrence argmax over objects, per prior
    ov_per_prior = jnp.max(iou, axis=0, keepdims=True)                      # (1, P)
    obj_per_prior = jnp.min(jnp.where(iou == ov_per_prior, obj_ids, Np),
                            axis=0, keepdims=True)                          # (1, P)

    # first-occurrence argmax over priors, per object
    max_per_obj = jnp.max(iou, axis=1, keepdims=True)                       # (Npad, 1)
    prior_per_obj = jnp.min(jnp.where(iou == max_per_obj, prior_ids, P),
                            axis=1, keepdims=True)                          # (Npad, 1)

    # force each valid object's best prior to point at that object (last wins);
    # one fused reduction gives both forced_obj and forced_any.
    force = (prior_ids == prior_per_obj) & valid                            # (Npad, P)
    forced_obj = jnp.max(jnp.where(force, obj_ids, -1), axis=0, keepdims=True)
    forced_any = forced_obj >= 0                                            # (1, P)
    obj_per_prior = jnp.where(forced_any, forced_obj, obj_per_prior)
    ov_per_prior = jnp.where(forced_any, 1.0, ov_per_prior)

    # ---- one MXU matmul gathers [label, cx, cy, log w, log h] for every prior ----
    one_hot = (obj_ids == obj_per_prior).astype(jnp.float32)                # (Npad, P)
    gathered = jnp.dot(stacked, one_hot, preferred_element_type=jnp.float32)  # (8, P)

    matched_label = gathered[0:1]
    true_class = jnp.where(ov_per_prior < overlap_threshold, 0.0, matched_label)
    tc_i = (true_class + 0.5).astype(jnp.int32)    # robust round (labels >= 0)
    pos = tc_i > 0                                                          # (1, P)

    # ---- gcxgcy encoding + smooth-L1 as stacked (4, P) ops ----
    g = (gathered[1:5] - pc[8:12]) * pc[12:16]                              # (4, P)
    loc_elem = jnp.sum(_smooth_l1(pred_locs - g), axis=0, keepdims=True)    # (1, P)
    loc_row = jnp.where(pos, loc_elem, 0.0)

    # ---- per-prior stable cross-entropy over classes ----
    m = jnp.max(scores, axis=0, keepdims=True)
    lse = jnp.log(jnp.sum(jnp.exp(scores - m), axis=0, keepdims=True)) + m
    class_ids = jax.lax.broadcasted_iota(jnp.int32, (C, 1), 0)
    picked = jnp.sum(jnp.where(class_ids == tc_i, scores, 0.0),
                     axis=0, keepdims=True)
    ce_row = lse - picked

    # lane-dense (3, P) output slab: rows [CE, masked smooth-L1, pos]
    out_ref[0] = jnp.concatenate([ce_row, loc_row, pos.astype(jnp.float32)], axis=0)


def multibox_loss(predicted_locs, predicted_scores, boxes, labels, priors_cxcy,
                  n_objects=None, overlap_threshold=0.5, neg_pos_ratio=3,
                  alpha=1.0, max_hard_negatives=None):
    B, P, _ = predicted_locs.shape
    C = predicted_scores.shape[2]
    N = boxes.shape[1]

    N_pad = ((N + 7) // 8) * 8
    P_pad = ((P + 127) // 128) * 128

    if n_objects is None:
        n_objects = jnp.full((B,), N, dtype=jnp.int32)
    n_objects = jnp.asarray(n_objects, dtype=jnp.int32)

    boxes_f = boxes.astype(jnp.float32)
    labels_f = labels.astype(jnp.float32)
    if N_pad != N:
        # zero-area padded boxes give IoU == 0 (no NaN); padded rows are also
        # masked to -1 inside the kernel so they can never be matched.
        boxes_f = jnp.pad(boxes_f, ((0, 0), (0, N_pad - N), (0, 0)))
        labels_f = jnp.pad(labels_f, ((0, 0), (0, N_pad - N)))

    # Per-object centre-form + log-size (moves the per-prior log to per-object;
    # clamp keeps zero-area padded rows finite through the one-hot matmul gather).
    b_cx = (boxes_f[..., 0] + boxes_f[..., 2]) * 0.5
    b_cy = (boxes_f[..., 1] + boxes_f[..., 3]) * 0.5
    b_w = boxes_f[..., 2] - boxes_f[..., 0]
    b_h = boxes_f[..., 3] - boxes_f[..., 1]
    b_lw = jnp.log(jnp.maximum(b_w, 1e-12))
    b_lh = jnp.log(jnp.maximum(b_h, 1e-12))
    stacked = jnp.stack([labels_f, b_cx, b_cy, b_lw, b_lh], axis=1)         # (B, 5, Npad)
    stacked = jnp.pad(stacked, ((0, 0), (0, 3), (0, 0)))                    # (B, 8, Npad)

    # prior-only constants computed once (batch-invariant), packed into (16, P):
    # rows 8..11 / 12..15 are sublane-aligned (4, P) offset / scale blocks.
    pcxcy = priors_cxcy.astype(jnp.float32)
    p_cx = pcxcy[:, 0]; p_cy = pcxcy[:, 1]; p_w = pcxcy[:, 2]; p_h = pcxcy[:, 3]
    px0 = p_cx - p_w * 0.5; py0 = p_cy - p_h * 0.5
    px1 = p_cx + p_w * 0.5; py1 = p_cy + p_h * 0.5
    zeros_p = jnp.zeros((P,), jnp.float32)
    fives_p = jnp.full((P,), 5.0, jnp.float32)
    prior_const = jnp.stack(
        [px0, py0, px1, py1, p_w * p_h, zeros_p, zeros_p, zeros_p,
         p_cx, p_cy, jnp.log(p_w), jnp.log(p_h),
         10.0 / p_w, 10.0 / p_h, fives_p, fives_p], axis=0)                 # (16, P)
    prior_const = jnp.pad(prior_const, ((0, 0), (0, P_pad - P)))            # (16, Ppad)

    # Predictions stay in model layout (no HBM transpose round-trip).
    locs_p = predicted_locs.astype(jnp.float32)                             # (B, P, 4)
    scores_p = predicted_scores.astype(jnp.float32)                         # (B, P, C)
    if P_pad != P:
        locs_p = jnp.pad(locs_p, ((0, 0), (0, P_pad - P), (0, 0)))
        scores_p = jnp.pad(scores_p, ((0, 0), (0, P_pad - P), (0, 0)))

    kernel = partial(multibox_kernel, overlap_threshold=float(overlap_threshold))

    out_all = pl.pallas_call(
        kernel,
        out_shape=jax.ShapeDtypeStruct((B, 3, P_pad), jnp.float32),
        grid_spec=pltpu.PrefetchScalarGridSpec(
            num_scalar_prefetch=1,
            grid=(B,),
            in_specs=[
                pl.BlockSpec((1, N_pad, 4), lambda i, nv: (i, 0, 0)),
                pl.BlockSpec((1, 8, N_pad), lambda i, nv: (i, 0, 0)),
                pl.BlockSpec((16, P_pad), lambda i, nv: (0, 0)),
                pl.BlockSpec((1, P_pad, 4), lambda i, nv: (i, 0, 0)),
                pl.BlockSpec((1, P_pad, C), lambda i, nv: (i, 0, 0)),
            ],
            out_specs=pl.BlockSpec((1, 3, P_pad), lambda i, nv: (i, 0, 0)),
        ),
        compiler_params=pltpu.CompilerParams(
            dimension_semantics=("parallel",),
            # v5e/v6e scoped defaults (16/32 MiB) are too small for the (Npad, P)
            # temporaries at production P; 48 MiB stays well under every chip's
            # physical VMEM (v7x should additionally use the P-tiling TODO above).
            vmem_limit_bytes=48 * 1024 * 1024),
    )(n_objects, boxes_f, stacked, prior_const, locs_p, scores_p)

    conf_all = out_all[:, 0, :]                 # (B, Ppad) per-prior cross-entropy
    loc_all = out_all[:, 1, :]                  # (B, Ppad) masked smooth-L1
    pos = out_all[:, 2, :] > 0.5                # (B, Ppad)

    prior_valid = jnp.arange(P_pad) < P
    pos = pos & prior_valid[None, :]

    n_pos = pos.sum(axis=1)
    # Guard against the all-negative corner case (PyTorch would produce NaN).
    total_pos = jnp.maximum(n_pos.sum().astype(jnp.float32), 1.0)

    # SmoothL1Loss(reduction='mean') over the (total_pos, 4) selected elements
    loc_loss = loc_all.sum() / (total_pos * 4.0)

    conf_pos_sum = jnp.where(pos, conf_all, 0.0).sum()
    conf_neg = jnp.where(pos | ~prior_valid[None, :], 0.0, conf_all)

    # Hard-negative mining in plain-JAX glue (no Pallas sort/top-k primitive).
    # max_hard_negatives=None keeps exact semantics (k = P); passing a static
    # bound >= neg_pos_ratio * max(n_pos) gives an identical result far cheaper
    # at production P where the full descending sort dominates wall-clock.
    k = P_pad if max_hard_negatives is None else min(int(max_hard_negatives), P_pad)
    neg_topk = jax.lax.top_k(conf_neg, k)[0]                     # (B, k) descending
    hard_mask = jnp.arange(k)[None, :] < (neg_pos_ratio * n_pos)[:, None]
    hard_neg_sum = jnp.where(hard_mask, neg_topk, 0.0).sum()

    conf_loss = (hard_neg_sum + conf_pos_sum) / total_pos
    return conf_loss + alpha * loc_loss


# -------------------- pure-JAX reference (same semantics) --------------------
def _ref_per_image(boxes, labels, priors_xy, priors_cxcy, thr):
    N = boxes.shape[0]
    ix = jnp.clip(jnp.minimum(boxes[:, None, 2], priors_xy[None, :, 2])
                  - jnp.maximum(boxes[:, None, 0], priors_xy[None, :, 0]), 0.0)
    iy = jnp.clip(jnp.minimum(boxes[:, None, 3], priors_xy[None, :, 3])
                  - jnp.maximum(boxes[:, None, 1], priors_xy[None, :, 1]), 0.0)
    inter = ix * iy
    area_b = (boxes[:, 2] - boxes[:, 0]) * (boxes[:, 3] - boxes[:, 1])
    area_p = (priors_xy[:, 2] - priors_xy[:, 0]) * (priors_xy[:, 3] - priors_xy[:, 1])
    iou = inter / (area_b[:, None] + area_p[None, :] - inter)
    ov = iou.max(axis=0)
    obj = iou.argmax(axis=0)
    prior_for_obj = iou.argmax(axis=1)
    obj = obj.at[prior_for_obj].set(jnp.arange(N))
    ov = ov.at[prior_for_obj].set(1.0)
    lab = jnp.where(ov < thr, 0, jnp.take(labels, obj))
    gb = boxes[obj]
    cxcy = jnp.concatenate([(gb[:, 2:] + gb[:, :2]) / 2.0, gb[:, 2:] - gb[:, :2]], axis=1)
    g = jnp.concatenate([(cxcy[:, :2] - priors_cxcy[:, :2]) / (priors_cxcy[:, 2:] / 10.0),
                         jnp.log(cxcy[:, 2:] / priors_cxcy[:, 2:]) * 5.0], axis=1)
    return g, lab


def reference_loss(predicted_locs, predicted_scores, boxes, labels, priors_cxcy,
                   thr=0.5, npr=3, alpha=1.0):
    priors_xy = jnp.concatenate([priors_cxcy[:, :2] - priors_cxcy[:, 2:] / 2.0,
                                 priors_cxcy[:, :2] + priors_cxcy[:, 2:] / 2.0], axis=1)
    true_locs, true_cls = jax.vmap(
        lambda b, l: _ref_per_image(b, l, priors_xy, priors_cxcy, thr))(boxes, labels)
    pos = true_cls != 0
    n_pos = pos.sum(axis=1)
    total = n_pos.sum().astype(jnp.float32)
    diff = predicted_locs - true_locs
    sl1 = jnp.where(jnp.abs(diff) < 1.0, 0.5 * diff * diff, jnp.abs(diff) - 0.5)
    loc_loss = jnp.where(pos[..., None], sl1, 0.0).sum() / (total * 4.0)
    lse = jax.nn.logsumexp(predicted_scores, axis=-1)
    picked = jnp.take_along_axis(predicted_scores, true_cls[..., None], axis=-1)[..., 0]
    ce = lse - picked
    conf_pos = jnp.where(pos, ce, 0.0).sum()
    conf_neg = jnp.where(pos, 0.0, ce)
    srt = jnp.sort(conf_neg, axis=1)[:, ::-1]
    mask = jnp.arange(ce.shape[1])[None, :] < (npr * n_pos)[:, None]
    hard = jnp.where(mask, srt, 0.0).sum()
    return (conf_pos + hard) / total + alpha * loc_loss


if __name__ == "__main__":
    key = jax.random.PRNGKey(0)
    B, P, C, N = 2, 256, 8, 4
    k1, k2, k3, k4, k5 = jax.random.split(key, 5)

    # deterministic priors: 16x16 grid of 0.2x0.2 boxes, (cx, cy, w, h)
    g = (jnp.arange(16, dtype=jnp.float32) + 0.5) / 16.0
    cy, cx = jnp.meshgrid(g, g, indexing="ij")
    priors_cxcy = jnp.stack([cx.reshape(-1), cy.reshape(-1),
                             jnp.full((P,), 0.2, jnp.float32),
                             jnp.full((P,), 0.2, jnp.float32)], axis=1)

    bc = jax.random.uniform(k1, (B, N, 2), minval=0.25, maxval=0.75)
    bwh = jax.random.uniform(k2, (B, N, 2), minval=0.10, maxval=0.35)
    boxes = jnp.concatenate([bc - bwh / 2.0, bc + bwh / 2.0], axis=-1).astype(jnp.float32)
    labels = jax.random.randint(k3, (B, N), 1, C)            # classes 1..C-1 (0 = background)

    predicted_locs = jax.random.normal(k4, (B, P, 4), dtype=jnp.float32)
    predicted_scores = jax.random.normal(k5, (B, P, C), dtype=jnp.float32)

    loss = multibox_loss(predicted_locs, predicted_scores, boxes, labels, priors_cxcy)
    loss = jax.block_until_ready(loss)

    ref = jax.block_until_ready(
        reference_loss(predicted_locs, predicted_scores, boxes, labels, priors_cxcy))

    assert bool(jnp.isfinite(loss)), f"non-finite loss: {loss}"
    assert bool(jnp.allclose(loss, ref, rtol=5e-3, atol=5e-3)), f"mismatch: {loss} vs {ref}"

    # bounded hard-negative mining path (cheap selection at production P) must
    # match the exact path when the bound covers 3 * n_pos
    loss_bounded = jax.block_until_ready(
        multibox_loss(predicted_locs, predicted_scores, boxes, labels, priors_cxcy,
                      max_hard_negatives=192))
    assert bool(jnp.allclose(loss_bounded, loss, rtol=1e-5, atol=1e-5)), \
        f"bounded-topk mismatch: {loss_bounded} vs {loss}"

    print("KERNEL_OK")
</pallas_src>

<mosaic_0001>
module attributes {stable_mosaic.version = 11 : i64} {
  func.func @multibox_kernel(%arg0: i32, %arg1: memref<2xi32, #tpu.memory_space<smem>>, %arg2: memref<1x8x4xf32, #tpu.memory_space<vmem>>, %arg3: memref<1x8x8xf32, #tpu.memory_space<vmem>>, %arg4: memref<16x256xf32, #tpu.memory_space<vmem>>, %arg5: memref<1x256x4xf32, #tpu.memory_space<vmem>>, %arg6: memref<1x256x8xf32, #tpu.memory_space<vmem>>, %arg7: memref<1x3x256xf32, #tpu.memory_space<vmem>>) attributes {dimension_semantics = [#tpu.dimension_semantics<parallel>], iteration_bounds = array<i64: 2>, scalar_prefetch = 1 : i64, scratch_operands = 0 : i64, tpu.core_type = #tpu.core_type<tc>, window_params = [{transform_indices = @transform_0, window_bounds = array<i64: 1, 8, 4>}, {transform_indices = @transform_1, window_bounds = array<i64: 1, 8, 8>}, {pipeline_mode = #tpu.pipeline_mode<synchronous>, transform_indices = @transform_2, window_bounds = array<i64: 16, 256>}, {transform_indices = @transform_3, window_bounds = array<i64: 1, 256, 4>}, {transform_indices = @transform_4, window_bounds = array<i64: 1, 256, 8>}, {transform_indices = @transform_5, window_bounds = array<i64: 1, 3, 256>}]} {
    %0 = arith.index_cast %arg0 : i32 to index
    %1 = memref.load %arg1[%0] : memref<2xi32, #tpu.memory_space<smem>>
    %c0 = arith.constant 0 : index
    %c0_0 = arith.constant 0 : index
    %c0_1 = arith.constant 0 : index
    %2 = vector.load %arg2[%c0, %c0_0, %c0_1] : memref<1x8x4xf32, #tpu.memory_space<vmem>>, vector<1x8x4xf32>
    %3 = vector.shape_cast %2 : vector<1x8x4xf32> to vector<8x4xf32>
    %c0_2 = arith.constant 0 : index
    %c0_3 = arith.constant 0 : index
    %c0_4 = arith.constant 0 : index
    %4 = vector.load %arg3[%c0_2, %c0_3, %c0_4] : memref<1x8x8xf32, #tpu.memory_space<vmem>>, vector<1x8x8xf32>
    %5 = vector.shape_cast %4 : vector<1x8x8xf32> to vector<8x8xf32>
    %c0_5 = arith.constant 0 : index
    %c0_6 = arith.constant 0 : index
    %6 = vector.load %arg4[%c0_5, %c0_6] : memref<16x256xf32, #tpu.memory_space<vmem>>, vector<16x256xf32>
    %c0_7 = arith.constant 0 : index
    %c0_8 = arith.constant 0 : index
    %c0_9 = arith.constant 0 : index
    %7 = vector.load %arg5[%c0_7, %c0_8, %c0_9] : memref<1x256x4xf32, #tpu.memory_space<vmem>>, vector<1x256x4xf32>
    %8 = vector.shape_cast %7 : vector<1x256x4xf32> to vector<256x4xf32>
    %c0_10 = arith.constant 0 : index
    %c0_11 = arith.constant 0 : index
    %c0_12 = arith.constant 0 : index
    %9 = vector.load %arg6[%c0_10, %c0_11, %c0_12] : memref<1x256x8xf32, #tpu.memory_space<vmem>>, vector<1x256x8xf32>
    %10 = vector.shape_cast %9 : vector<1x256x8xf32> to vector<256x8xf32>
    %11 = tpu.iota {dimensions = array<i32: 0>} : vector<8x8xi32>
    %12 = tpu.iota {dimensions = array<i32: 1>} : vector<8x8xi32>
    %13 = arith.cmpi eq, %11, %12 : vector<8x8xi32>
    %14 = arith.extui %13 : vector<8x8xi1> to vector<8x8xi32>
    %15 = arith.sitofp %14 : vector<8x8xi32> to vector<8x8xf32>
    %16 = tpu.iota {dimensions = array<i32: 0>} : vector<4x4xi32>
    %17 = tpu.iota {dimensions = array<i32: 1>} : vector<4x4xi32>
    %18 = arith.cmpi eq, %16, %17 : vector<4x4xi32>
    %19 = arith.extui %18 : vector<4x4xi1> to vector<4x4xi32>
    %20 = arith.sitofp %19 : vector<4x4xi32> to vector<4x4xf32>
    %cst = arith.constant dense<0.000000e+00> : vector<8x256xf32>
    %21 = tpu.matmul %15, %10, %cst {dimension_numbers = #tpu.dot_dimension_numbers<[1], [1], [0], [0], [0, 0, 1, 0], [], []>} : vector<8x8xf32>, vector<256x8xf32>, vector<8x256xf32> -> vector<8x256xf32>
    %cst_13 = arith.constant dense<0.000000e+00> : vector<4x256xf32>
    %22 = tpu.matmul %20, %8, %cst_13 {dimension_numbers = #tpu.dot_dimension_numbers<[1], [1], [0], [0], [0, 0, 1, 0], [], []>} : vector<4x4xf32>, vector<256x4xf32>, vector<4x256xf32> -> vector<4x256xf32>
    %23 = vector.extract_strided_slice %3 {offsets = [0, 0], sizes = [8, 1], strides = [1, 1]} : vector<8x4xf32> to vector<8x1xf32>
    %24 = vector.extract_strided_slice %3 {offsets = [0, 1], sizes = [8, 1], strides = [1, 1]} : vector<8x4xf32> to vector<8x1xf32>
    %25 = vector.extract_strided_slice %3 {offsets = [0, 2], sizes = [8, 1], strides = [1, 1]} : vector<8x4xf32> to vector<8x1xf32>
    %26 = vector.extract_strided_slice %3 {offsets = [0, 3], sizes = [8, 1], strides = [1, 1]} : vector<8x4xf32> to vector<8x1xf32>
    %27 = vector.extract_strided_slice %6 {offsets = [0, 0], sizes = [1, 256], strides = [1, 1]} : vector<16x256xf32> to vector<1x256xf32>
    %28 = vector.extract_strided_slice %6 {offsets = [1, 0], sizes = [1, 256], strides = [1, 1]} : vector<16x256xf32> to vector<1x256xf32>
    %29 = vector.extract_strided_slice %6 {offsets = [2, 0], sizes = [1, 256], strides = [1, 1]} : vector<16x256xf32> to vector<1x256xf32>
    %30 = vector.extract_strided_slice %6 {offsets = [3, 0], sizes = [1, 256], strides = [1, 1]} : vector<16x256xf32> to vector<1x256xf32>
    %31 = vector.extract_strided_slice %6 {offsets = [4, 0], sizes = [1, 256], strides = [1, 1]} : vector<16x256xf32> to vector<1x256xf32>
    %32 = vector.broadcast %25 : vector<8x1xf32> to vector<8x256xf32>
    %33 = vector.broadcast %29 : vector<1x256xf32> to vector<8x256xf32>
    %34 = arith.minimumf %32, %33 : vector<8x256xf32>
    %35 = vector.broadcast %23 : vector<8x1xf32> to vector<8x256xf32>
    %36 = vector.broadcast %27 : vector<1x256xf32> to vector<8x256xf32>
    %37 = arith.maximumf %35, %36 : vector<8x256xf32>
    %38 = arith.subf %34, %37 : vector<8x256xf32>
    %cst_14 = arith.constant 0.000000e+00 : f32
    %39 = vector.broadcast %cst_14 : f32 to vector<8x256xf32>
    %40 = arith.maximumf %38, %39 : vector<8x256xf32>
    %41 = vector.broadcast %26 : vector<8x1xf32> to vector<8x256xf32>
    %42 = vector.broadcast %30 : vector<1x256xf32> to vector<8x256xf32>
    %43 = arith.minimumf %41, %42 : vector<8x256xf32>
    %44 = vector.broadcast %24 : vector<8x1xf32> to vector<8x256xf32>
    %45 = vector.broadcast %28 : vector<1x256xf32> to vector<8x256xf32>
    %46 = arith.maximumf %44, %45 : vector<8x256xf32>
    %47 = arith.subf %43, %46 : vector<8x256xf32>
    %cst_15 = arith.constant 0.000000e+00 : f32
    %48 = vector.broadcast %cst_15 : f32 to vector<8x256xf32>
    %49 = arith.maximumf %47, %48 : vector<8x256xf32>
    %50 = arith.mulf %40, %49 : vector<8x256xf32>
    %51 = arith.subf %25, %23 : vector<8x1xf32>
    %52 = arith.subf %26, %24 : vector<8x1xf32>
    %53 = arith.mulf %51, %52 : vector<8x1xf32>
    %54 = vector.broadcast %53 : vector<8x1xf32> to vector<8x256xf32>
    %55 = vector.broadcast %31 : vector<1x256xf32> to vector<8x256xf32>
    %56 = arith.addf %54, %55 : vector<8x256xf32>
    %57 = arith.subf %56, %50 : vector<8x256xf32>
    %58 = arith.divf %50, %57 : vector<8x256xf32>
    %59 = tpu.iota {dimensions = array<i32: 0>} : vector<8x1xi32>
    %60 = tpu.iota {dimensions = array<i32: 1>} : vector<1x256xi32>
    %61 = vector.broadcast %1 : i32 to vector<8x1xi32>
    %62 = arith.cmpi slt, %59, %61 : vector<8x1xi32>
    %cst_16 = arith.constant -1.000000e+00 : f32
    %63 = vector.shape_cast %62 : vector<8x1xi1> to vector<8x1xi1>
    %64 = vector.broadcast %63 : vector<8x1xi1> to vector<8x256xi1>
    %65 = vector.broadcast %cst_16 : f32 to vector<8x256xf32>
    %66 = arith.select %64, %58, %65 : vector<8x256xi1>, vector<8x256xf32>
    %cst_17 = arith.constant dense<0xFF800000> : vector<256xf32>
    %67 = vector.multi_reduction <maximumf>, %66, %cst_17 [0] : vector<8x256xf32> to vector<256xf32>
    %68 = vector.shape_cast %67 : vector<256xf32> to vector<1x256xf32>
    %69 = vector.broadcast %68 : vector<1x256xf32> to vector<8x256xf32>
    %70 = arith.cmpf oeq, %66, %69 : vector<8x256xf32>
    %c8_i32 = arith.constant 8 : i32
    %71 = vector.shape_cast %59 : vector<8x1xi32> to vector<8x1xi32>
    %72 = vector.broadcast %71 : vector<8x1xi32> to vector<8x256xi32>
    %73 = vector.broadcast %c8_i32 : i32 to vector<8x256xi32>
    %74 = arith.select %70, %72, %73 : vector<8x256xi1>, vector<8x256xi32>
    %cst_18 = arith.constant dense<2147483647> : vector<256xi32>
    %75 = vector.multi_reduction <minsi>, %74, %cst_18 [0] : vector<8x256xi32> to vector<256xi32>
    %76 = vector.shape_cast %75 : vector<256xi32> to vector<1x256xi32>
    %cst_19 = arith.constant dense<0xFF800000> : vector<8xf32>
    %77 = vector.multi_reduction <maximumf>, %66, %cst_19 [1] : vector<8x256xf32> to vector<8xf32>
    %78 = vector.shape_cast %77 : vector<8xf32> to vector<8x1xf32>
    %79 = vector.broadcast %78 : vector<8x1xf32> to vector<8x256xf32>
    %80 = arith.cmpf oeq, %66, %79 : vector<8x256xf32>
    %c256_i32 = arith.constant 256 : i32
    %81 = vector.shape_cast %60 : vector<1x256xi32> to vector<1x256xi32>
    %82 = vector.broadcast %81 : vector<1x256xi32> to vector<8x256xi32>
    %83 = vector.broadcast %c256_i32 : i32 to vector<8x256xi32>
    %84 = arith.select %80, %82, %83 : vector<8x256xi1>, vector<8x256xi32>
    %cst_20 = arith.constant dense<2147483647> : vector<8xi32>
    %85 = vector.multi_reduction <minsi>, %84, %cst_20 [1] : vector<8x256xi32> to vector<8xi32>
    %86 = vector.shape_cast %85 : vector<8xi32> to vector<8x1xi32>
    %87 = vector.broadcast %60 : vector<1x256xi32> to vector<8x256xi32>
    %88 = vector.broadcast %86 : vector<8x1xi32> to vector<8x256xi32>
    %89 = arith.cmpi eq, %87, %88 : vector<8x256xi32>
    %90 = vector.broadcast %62 : vector<8x1xi1> to vector<8x256xi1>
    %91 = arith.andi %89, %90 : vector<8x256xi1>
    %c-1_i32 = arith.constant -1 : i32
    %92 = vector.shape_cast %59 : vector<8x1xi32> to vector<8x1xi32>
    %93 = vector.broadcast %92 : vector<8x1xi32> to vector<8x256xi32>
    %94 = vector.broadcast %c-1_i32 : i32 to vector<8x256xi32>
    %95 = arith.select %91, %93, %94 : vector<8x256xi1>, vector<8x256xi32>
    %cst_21 = arith.constant dense<-2147483648> : vector<256xi32>
    %96 = vector.multi_reduction <maxsi>, %95, %cst_21 [0] : vector<8x256xi32> to vector<256xi32>
    %97 = vector.shape_cast %96 : vector<256xi32> to vector<1x256xi32>
    %c0_i32 = arith.constant 0 : i32
    %98 = vector.broadcast %c0_i32 : i32 to vector<1x256xi32>
    %99 = arith.cmpi sge, %97, %98 : vector<1x256xi32>
    %100 = arith.select %99, %97, %76 : vector<1x256xi1>, vector<1x256xi32>
    %cst_22 = arith.constant 1.000000e+00 : f32
    %101 = vector.broadcast %cst_22 : f32 to vector<1x256xf32>
    %102 = arith.select %99, %101, %68 : vector<1x256xi1>, vector<1x256xf32>
    %103 = vector.broadcast %59 : vector<8x1xi32> to vector<8x256xi32>
    %104 = vector.broadcast %100 : vector<1x256xi32> to vector<8x256xi32>
    %105 = arith.cmpi eq, %103, %104 : vector<8x256xi32>
    %106 = arith.extui %105 : vector<8x256xi1> to vector<8x256xi32>
    %107 = arith.sitofp %106 : vector<8x256xi32> to vector<8x256xf32>
    %cst_23 = arith.constant dense<0.000000e+00> : vector<8x256xf32>
    %108 = tpu.matmul %5, %107, %cst_23 {dimension_numbers = #tpu.dot_dimension_numbers<[1], [0], [0], [1], [0, 0, 1, 1], [], []>} : vector<8x8xf32>, vector<8x256xf32>, vector<8x256xf32> -> vector<8x256xf32>
    %109 = vector.extract_strided_slice %108 {offsets = [0, 0], sizes = [1, 256], strides = [1, 1]} : vector<8x256xf32> to vector<1x256xf32>
    %cst_24 = arith.constant 5.000000e-01 : f32
    %110 = vector.broadcast %cst_24 : f32 to vector<1x256xf32>
    %111 = arith.cmpf olt, %102, %110 : vector<1x256xf32>
    %cst_25 = arith.constant 0.000000e+00 : f32
    %112 = vector.broadcast %cst_25 : f32 to vector<1x256xf32>
    %113 = arith.select %111, %112, %109 : vector<1x256xi1>, vector<1x256xf32>
    %cst_26 = arith.constant 5.000000e-01 : f32
    %114 = vector.broadcast %cst_26 : f32 to vector<1x256xf32>
    %115 = arith.addf %113, %114 : vector<1x256xf32>
    %116 = arith.fptosi %115 : vector<1x256xf32> to vector<1x256xi32>
    %c0_i32_27 = arith.constant 0 : i32
    %117 = vector.broadcast %c0_i32_27 : i32 to vector<1x256xi32>
    %118 = arith.cmpi sgt, %116, %117 : vector<1x256xi32>
    %119 = vector.extract_strided_slice %108 {offsets = [1, 0], sizes = [4, 256], strides = [1, 1]} : vector<8x256xf32> to vector<4x256xf32>
    %120 = vector.extract_strided_slice %6 {offsets = [8, 0], sizes = [4, 256], strides = [1, 1]} : vector<16x256xf32> to vector<4x256xf32>
    %121 = arith.subf %119, %120 : vector<4x256xf32>
    %122 = vector.extract_strided_slice %6 {offsets = [12, 0], sizes = [4, 256], strides = [1, 1]} : vector<16x256xf32> to vector<4x256xf32>
    %123 = arith.mulf %121, %122 : vector<4x256xf32>
    %124 = arith.subf %22, %123 : vector<4x256xf32>
    %125 = math.absf %124 : vector<4x256xf32>
    %cst_28 = arith.constant 1.000000e+00 : f32
    %126 = vector.broadcast %cst_28 : f32 to vector<4x256xf32>
    %127 = arith.cmpf olt, %125, %126 : vector<4x256xf32>
    %cst_29 = arith.constant 5.000000e-01 : f32
    %128 = vector.broadcast %cst_29 : f32 to vector<4x256xf32>
    %129 = arith.mulf %128, %124 : vector<4x256xf32>
    %130 = arith.mulf %129, %124 : vector<4x256xf32>
    %cst_30 = arith.constant 5.000000e-01 : f32
    %131 = vector.broadcast %cst_30 : f32 to vector<4x256xf32>
    %132 = arith.subf %125, %131 : vector<4x256xf32>
    %133 = arith.select %127, %130, %132 : vector<4x256xi1>, vector<4x256xf32>
    %cst_31 = arith.constant dense<0.000000e+00> : vector<256xf32>
    %134 = vector.multi_reduction <add>, %133, %cst_31 [0] : vector<4x256xf32> to vector<256xf32>
    %135 = vector.shape_cast %134 : vector<256xf32> to vector<1x256xf32>
    %cst_32 = arith.constant 0.000000e+00 : f32
    %136 = vector.broadcast %cst_32 : f32 to vector<1x256xf32>
    %137 = arith.select %118, %135, %136 : vector<1x256xi1>, vector<1x256xf32>
    %cst_33 = arith.constant dense<0xFF800000> : vector<256xf32>
    %138 = vector.multi_reduction <maximumf>, %21, %cst_33 [0] : vector<8x256xf32> to vector<256xf32>
    %139 = vector.shape_cast %138 : vector<256xf32> to vector<1x256xf32>
    %140 = vector.broadcast %139 : vector<1x256xf32> to vector<8x256xf32>
    %141 = arith.subf %21, %140 : vector<8x256xf32>
    %142 = math.exp %141 : vector<8x256xf32>
    %cst_34 = arith.constant dense<0.000000e+00> : vector<256xf32>
    %143 = vector.multi_reduction <add>, %142, %cst_34 [0] : vector<8x256xf32> to vector<256xf32>
    %144 = vector.shape_cast %143 : vector<256xf32> to vector<1x256xf32>
    %145 = math.log %144 : vector<1x256xf32>
    %146 = arith.addf %145, %139 : vector<1x256xf32>
    %147 = tpu.iota {dimensions = array<i32: 0>} : vector<8x1xi32>
    %148 = vector.broadcast %147 : vector<8x1xi32> to vector<8x256xi32>
    %149 = vector.broadcast %116 : vector<1x256xi32> to vector<8x256xi32>
    %150 = arith.cmpi eq, %148, %149 : vector<8x256xi32>
    %cst_35 = arith.constant 0.000000e+00 : f32
    %151 = vector.broadcast %cst_35 : f32 to vector<8x256xf32>
    %152 = arith.select %150, %21, %151 : vector<8x256xi1>, vector<8x256xf32>
    %cst_36 = arith.constant dense<0.000000e+00> : vector<256xf32>
    %153 = vector.multi_reduction <add>, %152, %cst_36 [0] : vector<8x256xf32> to vector<256xf32>
    %154 = vector.shape_cast %153 : vector<256xf32> to vector<1x256xf32>
    %155 = arith.subf %146, %154 : vector<1x256xf32>
    %156 = arith.extui %118 : vector<1x256xi1> to vector<1x256xi32>
    %157 = arith.sitofp %156 : vector<1x256xi32> to vector<1x256xf32>
    %158 = tpu.concatenate %155, %137, %157 in 0 : vector<1x256xf32>, vector<1x256xf32>, vector<1x256xf32> -> vector<3x256xf32>
    %c0_37 = arith.constant 0 : index
    %c0_38 = arith.constant 0 : index
    %c0_39 = arith.constant 0 : index
    %159 = vector.load %arg7[%c0_37, %c0_38, %c0_39] : memref<1x3x256xf32, #tpu.memory_space<vmem>>, vector<1x3x256xf32>
    %160 = vector.shape_cast %159 : vector<1x3x256xf32> to vector<3x256xf32>
    %161 = vector.shape_cast %158 : vector<3x256xf32> to vector<1x3x256xf32>
    tpu.vector_store %arg7[%c0_37, %c0_38, %c0_39], %161 {strides = array<i32>} : memref<1x3x256xf32, #tpu.memory_space<vmem>>, vector<1x3x256xf32>,
    return
  }
  func.func @transform_0(%arg0: i32, %arg1: memref<2xi32, #tpu.memory_space<smem>>) -> (i32, i32, i32) {
    %c0_i32 = arith.constant 0 : i32
    %c0_i32_0 = arith.constant 0 : i32
    %c0_i32_1 = arith.constant 0 : i32
    return %arg0, %c0_i32, %c0_i32_0 : i32, i32, i32
  }
  func.func @transform_1(%arg0: i32, %arg1: memref<2xi32, #tpu.memory_space<smem>>) -> (i32, i32, i32) {
    %c0_i32 = arith.constant 0 : i32
    %c0_i32_0 = arith.constant 0 : i32
    %c0_i32_1 = arith.constant 0 : i32
    return %arg0, %c0_i32, %c0_i32_0 : i32, i32, i32
  }
  func.func @transform_2(%arg0: i32, %arg1: memref<2xi32, #tpu.memory_space<smem>>) -> (i32, i32) {
    %c0_i32 = arith.constant 0 : i32
    %c0_i32_0 = arith.constant 0 : i32
    %c0_i32_1 = arith.constant 0 : i32
    return %c0_i32, %c0_i32_0 : i32, i32
  }
  func.func @transform_3(%arg0: i32, %arg1: memref<2xi32, #tpu.memory_space<smem>>) -> (i32, i32, i32) {
    %c0_i32 = arith.constant 0 : i32
    %c0_i32_0 = arith.constant 0 : i32
    %c0_i32_1 = arith.constant 0 : i32
    return %arg0, %c0_i32, %c0_i32_0 : i32, i32, i32
  }
  func.func @transform_4(%arg0: i32, %arg1: memref<2xi32, #tpu.memory_space<smem>>) -> (i32, i32, i32) {
    %c0_i32 = arith.constant 0 : i32
    %c0_i32_0 = arith.constant 0 : i32
    %c0_i32_1 = arith.constant 0 : i32
    return %arg0, %c0_i32, %c0_i32_0 : i32, i32, i32
  }
  func.func @transform_5(%arg0: i32, %arg1: memref<2xi32, #tpu.memory_space<smem>>) -> (i32, i32, i32) {
    %c0_i32 = arith.constant 0 : i32
    %c0_i32_0 = arith.constant 0 : i32
    %c0_i32_1 = arith.constant 0 : i32
    return %arg0, %c0_i32, %c0_i32_0 : i32, i32, i32
  }
}

</mosaic_0001>

<bundles_post_ra>
// kernel: tpu_custom_call.1
= control target key start
LH: loop header
LB: loop body
LE: loop exit
PB: predicated region body
PF: predicated region fallthrough
CT: control target
= control target key end

     0   :  { %s1902_s0 = inlined_call_operand.vmem [shape: s32[2], index: 0, kind: input, shape index: {}]   ;;  %s1903_s1 = inlined_call_operand.vmem [shape: f32[2,8,4], index: 1, kind: input, shape index: {}]   ;;  %s1904_s2 = inlined_call_operand.vmem [shape: f32[2,8,8], index: 2, kind: input, shape index: {}]   ;;  %s1905_s3 = inlined_call_operand.vmem [shape: f32[16,256], index: 3, kind: input, shape index: {}]   ;;  %s1906_s4 = inlined_call_operand.vmem [shape: f32[2,256,4], index: 4, kind: input, shape index: {}]   ;;  %s1907_s5 = inlined_call_operand.vmem [shape: f32[2,256,8], index: 5, kind: input, shape index: {}]   ;;  %s1908_s6 = inlined_call_operand.vmem [shape: f32[2,3,256], index: 6, kind: output, shape index: {}]  }
   0x1   :  { %s11_s23 = sshll.u32 %s1902_s0, 4  ;;  %s12_s23 = int_to_ptr.vmem [resolvable:$true] %s11_s23 }
   0x2   :  { %s1514_s24 = scalar_lea.vmem %s12_s23, 16  ;;  %p1519_p1 = scmp.lt.s32.totalorder %s12_s23, %s12_s23 }
   0x3   :  { %p1515_p0 = scmp.ne.s32.totalorder %s12_s23, %s1514_s24  ;;  %p1520_p2 = scmp.lt.s32.totalorder %s1514_s24, %s1514_s24 }
   0x5   :  { %p1521_p3 = por %p1520_p2, %p1519_p1 }
   0x7   :  { %p1522_p4 = pnand %p1521_p3, %p1515_p0 }
   0x9   :  { %1525 = shalt.err (!%p1522_p4)  }
   0xa   :  { %s1536_s25 = smov [#allocation3]  }
   0xb   :  { %14 = dma.vmem_to_smem %s12_s23, 16, %s1536_s25, [#allocation2] }
   0xc   :  { %1530 = dma.done.wait [#allocation2], 16 }
   0xd   :  { %1531 = vsyncadd [#allocation2], 4294967280 }
   0xe   :  { %16 = sfence }
   0xf   :  { %s1583_s26 = smov 0  }
  0x10 LB: > { %s1589_s0 = sadd.s32 4294967295, %s1534_s26   ;;  %p1221_p5 = scmp.ge.s32.totalorder %s1534_s26, 1  ;;  %s1534_s26 = sphi %s1583_s26, %s22_s26  }
  0x11   : > { %p222_p6 = scmp.lt.s32.totalorder %s1534_s26, 3 }
  0x13   : > { %p223_p7 = pnand %p1221_p5, %p222_p6 }
  0x14   : > { %p263_p8 = scmp.lt.s32.totalorder (!%p223_p7), %s1589_s0, 1  ;;  %v1537_v0 = vmov (!%p223_p7), 2   ;;  %v1538_v1 = vmov (!%p223_p7), 3   ;;  %s1539_s8 = smov (!%p223_p7), 2   ;;  %v1540_v3 = vmov (!%p223_p7), 0   ;;  %v1541_v4 = vmov (!%p223_p7), 1  }
  0x15   : > { %226 = sbr.rel (%p223_p7) target bundleno = 1125 (0x465), region = 40  ;;  %1496 = vset.pattern.permute.xlu1 (!%p223_p7), %v1537_v0  ;;  %1498 = vset.pattern.permute.xlu0 (!%p223_p7), %v1538_v1  ;;  %s1542_s9 = smov (!%p223_p7), 127   ;;  %v357_v9 = vlaneseq (!%p223_p7)  ;;  %v289_v15 = vld [vmem:[%s1905_s3] sm:$0xff] (!%p223_p7)  ;;  %v290_v16 = vld [vmem:[%s1905_s3 + $0x8] sm:$0xff] (!%p223_p7)  ;;  %vm364_vm4 = vcmask (!%p223_p7), 64512   ;;  %vm535_vm7 = vcmask (!%p223_p7), 31744  }
  0x16   : > { %s286_s14 = sld [smem:[#allocation3 + %s1589_s0]] (!%p223_p7)  ;;  %vm1665_vm6 = vmpackc.low (!%p223_p7), %vm364_vm4, %vm364_vm4 }
  0x17   : > { %v1604_v11 = vshrl.u32 (!%p223_p7), %v357_v9, 7  ;;  %vm1698_vm8 = vmpackc.low (!%p223_p7), %vm535_vm7, %vm535_vm7 }
  0x19   : > { %v712_v12 = vsub.s32 (!%p223_p7), 2, %v1604_v11  ;;  %v1608_v13 = vsub.s32 (!%p223_p7), 0, %v1604_v11  ;;  %v758_v17 = vsub.s32 (!%p223_p7), 1, %v1604_v11  ;;  %v744_v18 = vsub.s32 (!%p223_p7), 3, %v1604_v11 }
  0x1a   : > { %v788_v37 = vsub.s32 (!%p223_p7), 4, %v1604_v11 }
  0x1b   : > { %v713_v19 = vrot.slane (!%p223_p7), %v289_v15, %v712_v12  ;;  %v717_v20 = vrot.slane (!%p223_p7), %v290_v16, %v712_v12  ;;  %v727_v21 = vrot.slane (!%p223_p7), %v289_v15, %v1608_v13  ;;  %v731_v22 = vrot.slane (!%p223_p7), %v290_v16, %v1608_v13 }
  0x1c   : > { %s1595_s27 = scalar_select %p263_p8, %s1589_s0, 1  ;;  %v759_v23 = vrot.slane %v289_v15, %v758_v17  ;;  %v763_v24 = vrot.slane %v290_v16, %v758_v17  ;;  %v745_v25 = vrot.slane %v289_v15, %v744_v18  ;;  %v749_v26 = vrot.slane %v290_v16, %v744_v18 }
  0x1d   : > { %v789_v42 = vrot.slane %v289_v15, %v788_v37  ;;  %v793_v43 = vrot.slane %v290_v16, %v788_v37  ;;  %v803_v55 = vstv %s286_s14  ;;  %v1543_v17 = vmov 0.0  }
  0x1e   : > { %s1598_s28 = sshll.u32 %s1595_s27, 3  ;;  %vm1623_vm0 = vcmp.lt.s32.totalorder %v1604_v11, %v803_v55  ;;  %s1308_s15 = sshll.u32 %s1595_s27, 8 }
  0x1f   : > { %s266_s7 = scalar_lea.vmem %s1903_s1, %s1598_s28  ;;  %s1656_s18 = scalar_lea.vmem %s1907_s5, %s1308_s15 }
  0x20   : > { %v287_v2 = vld [vmem:[%s266_s7] sm:$0xff]  ;;  %v326_v15 = vld [vmem:[%s1656_s18 + $0x8] sm:$0xff]  ;;  %v343_v16 = vld [vmem:[%s1656_s18 + $0x90] sm:$0xff]  ;;  %s1692_s21 = scalar_lea.vmem %s1906_s4, %s1308_s15  ;;  %s270_s24 = scalar_lea.vmem %s1904_s2, %s1598_s28 }
  0x21   : > { %772 = vrot.lane.b32.xlu0 %v287_v2, %s1539_s8  ;;  %707 = vperm.xlu1 %1496, %v287_v2   ;;  %v297_v55 = vld [vmem:[%s1692_s21 + $0x20] sm:$0xff]  ;;  %s285_s8 = scalar_lea.vmem %s1908_s6, %s1598_s28 }
  0x25   : > { %1497 = vset.pattern.permute.xlu1 %v1540_v3 }
  0x26   : > { %721 = vperm.xlu1 %1497, %v287_v2  }
  0x2a   : > { %1499 = vset.pattern.permute.xlu1 %v1541_v4 }
  0x2b   : > { %753 = vperm.xlu1 %1499, %v287_v2  }
  0x2f   : > { %1500 = vset.pattern.permute.xlu1 %v1537_v0 }
  0x93   : > { %v773_v5 = vpop.permute.xlu0 %772 }
  0x94   : > { %v775_v6 = vsub.f32 %v287_v2, %v773_v5 }
  0x96   : > { %777 = vrot.lane.b32.xlu0 %v775_v6, %s1542_s9 }
  0x9a   : > { %739 = vperm.xlu0 %1498, %v287_v2  }
  0x9e   : > { %1501 = vset.pattern.permute.xlu0 %v1537_v0  ;;  %v1637_v0 = vand.u32 127, %v357_v9  ;;  %v342_v9 = vld [vmem:[%s1656_s18 + $0x88] sm:$0xff] }
  0xa0   : > { %v708_v10 = vpop.permute.xlu1 %707  ;;  %v1640_v1 = vadd.s32 128, %v1637_v0  ;;  %vm361_vm5 = vcmp.eq.s32.totalorder %v1604_v11, %v1637_v0 }
  0xa1   : > { %v718_v29 = vmin.f32 %v708_v10, %v713_v19  ;;  %v719_v30 = vmin.f32 %v708_v10, %v717_v20  ;;  %v325_v10 = vld [vmem:[%s1656_s18] sm:$0xff]  ;;  %v1672_v18 = vsel %vm361_vm5, 1.0, %v1543_v17  ;;  %v344_v20 = vld [vmem:[%s1656_s18 + $0x98] sm:$0xff] }
  0xa2   : > { %v1382_v19 = vpack.c.bf16 %v326_v15, %v325_v10  ;;  %1343 = vmatprep.mubr.msk.f32.mxu0 %vm364_vm4, %v1672_v18  ;;  %1377 = vmatprep.mubr.msk.f32.mxu1 %vm535_vm7, %v1672_v18  ;;  %v299_v10 = vld [vmem:[%s1692_s21 + $0x30] sm:$0xff] }
  0xa5   : > { %v722_v14 = vpop.permute.xlu1 %721 }
  0xa6   : > { %v732_v31 = vmax.f32 %v722_v14, %v727_v21  ;;  %v733_v32 = vmax.f32 %v722_v14, %v731_v22  ;;  %v1385_v21 = vpack.c.bf16 %v344_v20, %v343_v16  ;;  %v327_v22 = vld [vmem:[%s1656_s18 + $0x10] sm:$0xff]  ;;  %v317_v16 = vld [vmem:[%s1692_s21 + $0xc0] sm:$0xff]  ;;  %v320_v14 = vld [vmem:[%s1692_s21 + $0xd8] sm:$0xff] }
  0xa8   : > { %v734_v38 = vsub.f32 %v718_v29, %v732_v31  ;;  %v735_v39 = vsub.f32 %v719_v30, %v733_v32  ;;  %v310_v29 = vld [vmem:[%s1692_s21 + $0x88] sm:$0xff]  ;;  %v293_v32 = vld [vmem:[%s1692_s21] sm:$0xff] }
  0xaa   : > { %v754_v27 = vpop.permute.xlu1 %753  ;;  %v736_v44 = vmax.f32 %v734_v38, 0.0  ;;  %v737_v45 = vmax.f32 %v735_v39, 0.0  ;;  %v312_v38 = vld [vmem:[%s1692_s21 + $0x98] sm:$0xff]  ;;  %v347_v39 = vld [vmem:[%s1656_s18 + $0xb0] sm:$0xff] }
  0xab   : > { %v764_v33 = vmax.f32 %v754_v27, %v759_v23  ;;  %v765_v34 = vmax.f32 %v754_v27, %v763_v24  ;;  %v328_v23 = vld [vmem:[%s1656_s18 + $0x18] sm:$0xff]  ;;  %v345_v24 = vld [vmem:[%s1656_s18 + $0xa0] sm:$0xff] }
 0x108   : > { %v778_v7 = vpop.permute.xlu0 %777 }
 0x109   : > { %v780_v8 = vmul.f32 %v778_v7, %v775_v6 }
 0x10b   : > { %783 = vperm.xlu1 %1500, %v780_v8   ;;  %v341_v8 = vld [vmem:[%s1656_s18 + $0x80] sm:$0xff] }
 0x10c   : > { %v1379_v12 = vpack.c.bf16 %v342_v9, %v341_v8  ;;  %v352_v8 = vld [vmem:[%s1656_s18 + $0xd8] sm:$0xff] }
 0x10e   : > { %1381 = vmatprep.subr.msk.bf16.mxu0 %vm1665_vm6, %v1379_v12  ;;  %v300_v12 = vld [vmem:[%s1692_s21 + $0x38] sm:$0xff] }
 0x10f   : > { %1384 = vmatpush3.bf16.xpose.msk.msra.mxu0 %vm1665_vm6, %v1382_v19  ;;  %v318_v19 = vld [vmem:[%s1692_s21 + $0xc8] sm:$0xff]  ;;  %v1448_v20 = vpack.c.bf16 %v300_v12, %v299_v10 }
 0x110   : > { %1387 = vmatprep.subr.msk.bf16.mxu0 %vm1665_vm6, %v1385_v21  ;;  %v1451_v21 = vpack.c.bf16 %v318_v19, %v317_v16 }
 0x119   : > { %v740_v28 = vpop.permute.xlu0 %739 }
 0x11a   : > { %v750_v35 = vmin.f32 %v740_v28, %v745_v25  ;;  %v751_v36 = vmin.f32 %v740_v28, %v749_v26  ;;  %v346_v25 = vld [vmem:[%s1656_s18 + $0xa8] sm:$0xff]  ;;  %v1388_v26 = vpack.c.bf16 %v328_v23, %v327_v22  ;;  %v309_v28 = vld [vmem:[%s1692_s21 + $0x80] sm:$0xff]  ;;  %v335_v22 = vld [vmem:[%s1656_s18 + $0x50] sm:$0xff] }
 0x11b   : > { %v1391_v27 = vpack.c.bf16 %v346_v25, %v345_v24  ;;  %v1427_v31 = vpack.c.bf16 %v310_v29, %v309_v28  ;;  %v336_v23 = vld [vmem:[%s1656_s18 + $0x58] sm:$0xff]  ;;  %v353_v24 = vld [vmem:[%s1656_s18 + $0xe0] sm:$0xff]  ;;  %v354_v25 = vld [vmem:[%s1656_s18 + $0xe8] sm:$0xff] }
 0x11c   : > { %v766_v40 = vsub.f32 %v750_v35, %v764_v33  ;;  %v767_v41 = vsub.f32 %v751_v36, %v765_v34  ;;  %1390 = vmatpush3.bf16.xpose.msk.msra.mxu0 %vm1665_vm6, %v1388_v26  ;;  %v294_v33 = vld [vmem:[%s1692_s21 + $0x8] sm:$0xff]  ;;  %v311_v34 = vld [vmem:[%s1692_s21 + $0x90] sm:$0xff]  ;;  %v329_v35 = vld [vmem:[%s1656_s18 + $0x20] sm:$0xff]  ;;  %v1412_v26 = vpack.c.bf16 %v336_v23, %v335_v22  ;;  %v1415_v29 = vpack.c.bf16 %v354_v25, %v353_v24 }
 0x11d   : > { %1393 = vmatprep.subr.msk.bf16.mxu0 %vm1665_vm6, %v1391_v27  ;;  %v330_v36 = vld [vmem:[%s1656_s18 + $0x28] sm:$0xff]  ;;  %v1430_v37 = vpack.c.bf16 %v294_v33, %v293_v32  ;;  %1429 = vmatprep.subr.msk.bf16.mxu1 %vm1698_vm8, %v1427_v31  ;;  %v301_v27 = vld [vmem:[%s1692_s21 + $0x40] sm:$0xff] }
 0x11e   : > { %v768_v46 = vmax.f32 %v766_v40, 0.0  ;;  %v769_v47 = vmax.f32 %v767_v41, 0.0  ;;  %v348_v40 = vld [vmem:[%s1656_s18 + $0xb8] sm:$0xff]  ;;  %v1433_v41 = vpack.c.bf16 %v312_v38, %v311_v34  ;;  %v302_v28 = vld [vmem:[%s1692_s21 + $0x48] sm:$0xff]  ;;  %v337_v32 = vld [vmem:[%s1656_s18 + $0x60] sm:$0xff] }
 0x11f   : > { %1432 = vmatpush3.bf16.xpose.msk.msra.mxu1 %vm1698_vm8, %v1430_v37  ;;  %v1454_v31 = vpack.c.bf16 %v302_v28, %v301_v27  ;;  %v338_v33 = vld [vmem:[%s1656_s18 + $0x68] sm:$0xff]  ;;  %v355_v34 = vld [vmem:[%s1656_s18 + $0xf0] sm:$0xff] }
 0x120   : > { %v770_v49 = vmul.f32 %v768_v46, %v736_v44  ;;  %v771_v50 = vmul.f32 %v769_v47, %v737_v45  ;;  %1435 = vmatprep.subr.msk.bf16.mxu1 %vm1698_vm8, %v1433_v41  ;;  %v296_v44 = vld [vmem:[%s1692_s21 + $0x18] sm:$0xff]  ;;  %v1397_v45 = vpack.c.bf16 %v348_v40, %v347_v39  ;;  %v313_v46 = vld [vmem:[%s1692_s21 + $0xa0] sm:$0xff]  ;;  %v314_v47 = vld [vmem:[%s1692_s21 + $0xa8] sm:$0xff] }
 0x121   : > { %v339_v38 = vld [vmem:[%s1656_s18 + $0x70] sm:$0xff]  ;;  %v340_v39 = vld [vmem:[%s1656_s18 + $0x78] sm:$0xff] }
 0x122   : > { %v1424_v40 = vpack.c.bf16 %v340_v39, %v339_v38 }
 0x18a   : > { %v784_v48 = vpop.permute.xlu1 %783 }
 0x18b   : > { %v794_v51 = vadd.f32 %v789_v42, %v784_v48  ;;  %v795_v52 = vadd.f32 %v793_v43, %v784_v48  ;;  %v1394_v42 = vpack.c.bf16 %v330_v36, %v329_v35  ;;  %v295_v43 = vld [vmem:[%s1692_s21 + $0x10] sm:$0xff]  ;;  %v356_v35 = vld [vmem:[%s1656_s18 + $0xf8] sm:$0xff]  ;;  %v1418_v36 = vpack.c.bf16 %v338_v33, %v337_v32 }
 0x18c   : > { %v1436_v48 = vpack.c.bf16 %v296_v44, %v295_v43  ;;  %v1421_v37 = vpack.c.bf16 %v356_v35, %v355_v34 }
 0x18d   : > { %v796_v53 = vsub.f32 %v794_v51, %v770_v49  ;;  %v797_v54 = vsub.f32 %v795_v52, %v771_v50  ;;  %1396 = vmatpush3.bf16.xpose.msk.msra.mxu0 %vm1665_vm6, %v1394_v42  ;;  %v332_v51 = vld [vmem:[%s1656_s18 + $0x38] sm:$0xff]  ;;  %v349_v52 = vld [vmem:[%s1656_s18 + $0xc0] sm:$0xff] }
 0x18e   : > { %1399 = vmatprep.subr.msk.bf16.mxu0 %vm1665_vm6, %v1397_v45  ;;  %1438 = vmatpush3.bf16.xpose.msk.msra.mxu1 %vm1698_vm8, %v1436_v48  ;;  %v319_v45 = vld [vmem:[%s1692_s21 + $0xd0] sm:$0xff]  ;;  %v304_v48 = vld [vmem:[%s1692_s21 + $0x58] sm:$0xff] }
 0x18f   : > { %1502 = vrcp.f32 %v796_v53  ;;  %v350_v53 = vld [vmem:[%s1656_s18 + $0xc8] sm:$0xff] }
 0x190   : > { %1504 = vrcp.f32 %v797_v54 }
 0x199   : > { %v1503_v56 = vpop.eup %1502 }
 0x19a   : > { %v1505_v58 = vpop.eup %1504  ;;  %v799_v59 = vmul.f32 %v1503_v56, %v770_v49  ;;  %v1439_v49 = vpack.c.bf16 %v314_v47, %v313_v46  ;;  %v298_v56 = vld [vmem:[%s1692_s21 + $0x28] sm:$0xff]  ;;  %v1457_v46 = vpack.c.bf16 %v320_v14, %v319_v45  ;;  %v303_v47 = vld [vmem:[%s1692_s21 + $0x50] sm:$0xff] }
 0x19b   : > { %v801_v60 = vmul.f32 %v1505_v58, %v771_v50  ;;  %v331_v50 = vld [vmem:[%s1656_s18 + $0x30] sm:$0xff]  ;;  %v1403_v58 = vpack.c.bf16 %v350_v53, %v349_v52  ;;  %v306_v52 = vld [vmem:[%s1692_s21 + $0x68] sm:$0xff] }
 0x19c   : > { %v1629_v61 = vsel %vm1623_vm0, %v799_v59, -1.0  ;;  %v1400_v54 = vpack.c.bf16 %v332_v51, %v331_v50  ;;  %1441 = vmatprep.subr.msk.bf16.mxu1 %vm1698_vm8, %v1439_v49  ;;  %v315_v59 = vld [vmem:[%s1692_s21 + $0xb0] sm:$0xff]  ;;  %v1460_v49 = vpack.c.bf16 %v304_v48, %v303_v47  ;;  %v305_v51 = vld [vmem:[%s1692_s21 + $0x60] sm:$0xff] }
 0x19d   : > { %v1633_v62 = vsel %vm1623_vm0, %v801_v60, -1.0  ;;  %v316_v60 = vld [vmem:[%s1692_s21 + $0xb8] sm:$0xff]  ;;  %v1466_v53 = vpack.c.bf16 %v306_v52, %v305_v51 }
 0x19e   : > { %v843_v63 = vmax.f32 %v1629_v61, %v1633_v62  ;;  %1402 = vmatpush3.bf16.xpose.msk.msra.mxu0 %vm1665_vm6, %v1400_v54  ;;  %v323_v54 = vld [vmem:[%s1692_s21 + $0xf0] sm:$0xff] }
 0x19f   : > { %1405 = vmatprep.subr.msk.bf16.mxu0 %vm1665_vm6, %v1403_v58  ;;  %v307_v58 = vld [vmem:[%s1692_s21 + $0x70] sm:$0xff] }
 0x1a0   : > { %844 = vmax.xlane.f32.xlu0 %v843_v63  ;;  %v1442_v63 = vpack.c.bf16 %v298_v56, %v297_v55  ;;  %v324_v55 = vld [vmem:[%s1692_s21 + $0xf8] sm:$0xff] }
 0x1a1   : > { %v1469_v56 = vpack.c.bf16 %v324_v55, %v323_v54 }
 0x1a2   : > { %1444 = vmatpush3.bf16.xpose.msk.msra.mxu1 %vm1698_vm8, %v1442_v63  ;;  %v809_v63 = vrot.slane %v1629_v61, 4 }
 0x22d   : > { %v845_v2 = vpop.xlane.xlu0 %844 }
 0x22e   : > { %vm846_vm1 = vcmp.eq.f32.partialorder %v1629_v61, %v845_v2  ;;  %vm847_vm2 = vcmp.eq.f32.partialorder %v1633_v62, %v845_v2  ;;  %v1445_v2 = vpack.c.bf16 %v316_v60, %v315_v59  ;;  %v308_v59 = vld [vmem:[%s1692_s21 + $0x78] sm:$0xff] }
 0x22f   : > { %v848_v3 = vsel %vm846_vm1, %v1637_v0, 256  ;;  %v849_v4 = vsel %vm847_vm2, %v1640_v1, 256  ;;  %v1472_v60 = vpack.c.bf16 %v308_v59, %v307_v58 }
 0x230   : > { %vm850_vm3 = vcmp.lt.s32.totalorder %v848_v3, %v849_v4  ;;  %1447 = vmatprep.subr.msk.bf16.mxu1 %vm1698_vm8, %v1445_v2  ;;  %v815_v2 = vrot.slane %v1633_v62, 4 }
 0x231   : > { %v1646_v5 = vsel %vm850_vm3, %v848_v3, %v849_v4  ;;  %v333_v3 = vld [vmem:[%s1656_s18 + $0x40] sm:$0xff]  ;;  %v334_v4 = vld [vmem:[%s1656_s18 + $0x48] sm:$0xff]  ;;  %1450 = vmatpush3.bf16.xpose.msk.msra.mxu1 %vm1698_vm8, %v1448_v20 }
 0x232   : > { %v853_v6 = vshra.s32 %v1646_v5, 16  ;;  %v1406_v9 = vpack.c.bf16 %v334_v4, %v333_v3  ;;  %1453 = vmatprep.subr.msk.bf16.mxu1 %vm1698_vm8, %v1451_v21  ;;  %v852_v41 = vand.u32 65535, %v1646_v5  ;;  %v321_v5 = vld [vmem:[%s1692_s21 + $0xe0] sm:$0xff]  ;;  %v810_v3 = vmax.f32 %v1629_v61, %v809_v63 }
 0x233   : > { %v816_v4 = vmax.f32 %v1633_v62, %v815_v2 }
 0x234   : > { %v1649_v7 = vcvt.s32.f32 %v853_v6  ;;  %v351_v6 = vld [vmem:[%s1656_s18 + $0xd0] sm:$0xff]  ;;  %1408 = vmatpush3.bf16.xpose.msk.msra.mxu0 %vm1665_vm6, %v1406_v9  ;;  %v854_v43 = vcvt.s32.f32 %v852_v41 }
 0x235   : > { %v1409_v15 = vpack.c.bf16 %v352_v8, %v351_v6  ;;  %v811_v6 = vrot.slane %v810_v3, 2  ;;  %v817_v8 = vrot.slane %v816_v4, 2 }
 0x236   : > { %856 = vmin.xlane.f32.xlu1 %v1649_v7 }
 0x237   : > { %1411 = vmatprep.subr.msk.bf16.mxu0 %vm1665_vm6, %v1409_v15  ;;  %v812_v9 = vmax.f32 %v810_v3, %v811_v6  ;;  %v818_v10 = vmax.f32 %v816_v4, %v817_v8 }
 0x239   : > { %1456 = vmatpush3.bf16.xpose.msk.msra.mxu1 %vm1698_vm8, %v1454_v31  ;;  %v813_v12 = vrot.slane %v812_v9, 1  ;;  %v819_v15 = vrot.slane %v818_v10, 1 }
 0x23a   : > { %1459 = vmatprep.subr.msk.bf16.mxu1 %vm1698_vm8, %v1457_v46 }
 0x23b   : > { %v1823_v16 = vmax.f32 %v812_v9, %v813_v12  ;;  %v1825_v30 = vmax.f32 %v818_v10, %v819_v15 }
 0x23c   : > { %1414 = vmatpush3.bf16.xpose.msk.msra.mxu0 %vm1665_vm6, %v1412_v26 }
 0x23d   : > { %1417 = vmatprep.subr.msk.bf16.mxu0 %vm1665_vm6, %v1415_v29  ;;  %vm821_vm10 = vcmp.eq.f32.partialorder %v1629_v61, %v1823_v16  ;;  %vm822_vm11 = vcmp.eq.f32.partialorder %v1633_v62, %v1825_v30 }
 0x23e   : > { %v824_v19 = vsel %vm822_vm11, %v1604_v11, 8 }
 0x23f   : > { %v834_v21 = vrot.slane %v824_v19, 4 }
 0x241   : > { %1462 = vmatpush3.bf16.xpose.msk.msra.mxu1 %vm1698_vm8, %v1460_v49  ;;  %vm835_vm13 = vcmp.lt.s32.totalorder %v824_v19, %v834_v21 }
 0x242   : > { %v836_v27 = vsel %vm835_vm13, %v824_v19, %v834_v21 }
 0x243   : > { %v837_v61 = vrot.slane %v836_v27, 2 }
 0x244   : > { %1420 = vmatpush3.bf16.xpose.msk.msra.mxu0 %vm1665_vm6, %v1418_v36 }
 0x245   : > { %1423 = vmatprep.subr.msk.bf16.mxu0 %vm1665_vm6, %v1421_v37  ;;  %vm838_vm5 = vcmp.lt.s32.totalorder %v836_v27, %v837_v61 }
 0x246   : > { %v839_v36 = vsel %vm838_vm5, %v836_v27, %v837_v61  ;;  %v292_v27 = vld [vmem:[%s1905_s3 + $0x18] sm:$0xff] }
 0x24c   : > { %1426 = vmatpush3.bf16.xpose.msk.msra.mxu0 %vm1665_vm6, %v1424_v40  ;;  %v840_v40 = vrot.slane %v839_v36, 1 }
 0x253   : > { %1344 = vmatmul.mubr.msk.f32.vlgmr.msra.gmra.mrb[0].mxu0 %vm364_vm4, %v1672_v18 }
 0x254   : > { %969 = vmatprep.mubr.f32.mxu0 %v1543_v17 }
 0x2c3   : > { %v857_v42 = vpop.xlane.xlu1 %856 }
 0x2c4   : > { %vm858_vm9 = vcmp.eq.f32.partialorder %v1649_v7, %v857_v42  ;;  %v322_v7 = vld [vmem:[%s1692_s21 + $0xe8] sm:$0xff]  ;;  %v863_v22 = vcvt.f32.s32 %v857_v42 }
 0x2c5   : > { %v859_v44 = vsel %vm858_vm9, %v854_v43, inf  ;;  %v1463_v50 = vpack.c.bf16 %v322_v7, %v321_v5  ;;  %v288_v5 = vld [vmem:[%s270_s24] sm:$0xff]  ;;  %v1544_v7 = vmov 1.0  }
 0x2c6   : > { %860 = vmin.xlane.f32.xlu0 %v859_v44  ;;  %v864_v25 = vshll.u32 %v863_v22, 16 }
 0x2c7   : > { %1465 = vmatprep.subr.msk.bf16.mxu1 %vm1698_vm8, %v1463_v50 }
 0x2c8   : > { %1468 = vmatpush3.bf16.xpose.msk.msra.mxu1 %vm1698_vm8, %v1466_v53 }
 0x2c9   : > { %1471 = vmatprep.subr.msk.bf16.mxu1 %vm1698_vm8, %v1469_v56 }
 0x2d0   : > { %1474 = vmatpush3.bf16.xpose.msk.msra.mxu1 %vm1698_vm8, %v1472_v60 }
 0x2d7   : > { %1378 = vmatmul.mubr.msk.f32.vlgmr.msra.gmra.mrb[0].mxu1 %vm535_vm7, %v1672_v18  ;;  %v823_v18 = vsel %vm821_vm10, %v1604_v11, 8  ;;  %vm841_vm10 = vcmp.lt.s32.totalorder %v839_v36, %v840_v40 }
 0x2d8   : > { %v825_v20 = vrot.slane %v823_v18, 4  ;;  %v842_v47 = vsel %vm841_vm10, %v839_v36, %v840_v40  ;;  %vm1115_vm10 = vcmask 1040384  }
 0x2da   : > { %vm826_vm12 = vcmp.lt.s32.totalorder %v823_v18, %v825_v20 }
 0x2db   : > { %v827_v24 = vsel %vm826_vm12, %v823_v18, %v825_v20 }
 0x2dc   : > { %v828_v29 = vrot.slane %v827_v24, 2 }
 0x2de   : > { %vm829_vm3 = vcmp.lt.s32.totalorder %v827_v24, %v828_v29 }
 0x326   : > { %v1841_v34 = vpop.f32.mrb[0].mxu0 }
 0x327   : > { %v1843_v35 = vpop.f32.mrb[1].mxu0  ;;  %v1037_v52 = vrot.slane %v1841_v34, 4 }
 0x328   : > { %v1043_v53 = vrot.slane %v1843_v35, 4 }
 0x329   : > { %v1038_v54 = vmax.f32 %v1841_v34, %v1037_v52 }
 0x32a   : > { %v1044_v55 = vmax.f32 %v1843_v35, %v1043_v53 }
 0x32b   : > { %v1039_v56 = vrot.slane %v1038_v54, 2 }
 0x32c   : > { %v1045_v58 = vrot.slane %v1044_v55, 2 }
 0x32d   : > { %v1040_v59 = vmax.f32 %v1038_v54, %v1039_v56 }
 0x32e   : > { %v1046_v60 = vmax.f32 %v1044_v55, %v1045_v58 }
 0x32f   : > { %v1041_v63 = vrot.slane %v1040_v59, 1 }
 0x330   : > { %v1047_v2 = vrot.slane %v1046_v60, 1 }
 0x331   : > { %v1860_v3 = vmax.f32 %v1040_v59, %v1041_v63 }
 0x332   : > { %v1862_v4 = vmax.f32 %v1046_v60, %v1047_v2 }
 0x333   : > { %v1049_v6 = vsub.f32 %v1841_v34, %v1860_v3 }
 0x334   : > { %v1050_v8 = vsub.f32 %v1843_v35, %v1862_v4 }
 0x335   : > { %v1051_v9 = vmul.f32 1.442695, %v1049_v6 }
 0x336   : > { %v1053_v10 = vmul.f32 1.442695, %v1050_v8 }
 0x337   : > { %1506 = vpow2.f32 %v1051_v9 }
 0x338   : > { %1508 = vpow2.f32 %v1053_v10 }
 0x341   : > { %v1507_v12 = vpop.eup %1506 }
 0x342   : > { %v1509_v15 = vpop.eup %1508  ;;  %v1055_v18 = vrot.slane %v1507_v12, 4 }
 0x343   : > { %v1061_v19 = vrot.slane %v1509_v15, 4 }
 0x344   : > { %v1056_v20 = vadd.f32 %v1507_v12, %v1055_v18 }
 0x345   : > { %v1062_v21 = vadd.f32 %v1509_v15, %v1061_v19 }
 0x346   : > { %v1057_v22 = vrot.slane %v1056_v20, 2 }
 0x353   : > { %v861_v23 = vpop.xlane.xlu0 %860 }
 0x354   : > { %v862_v26 = vcvt.f32.s32 %v861_v23  ;;  %v1063_v23 = vrot.slane %v1062_v21, 2 }
 0x356   : > { %v865_v28 = vadd.s32 %v864_v25, %v862_v26  ;;  %v1064_v25 = vadd.f32 %v1063_v23, %v1062_v21  ;;  %v291_v26 = vld [vmem:[%s1905_s3 + $0x10] sm:$0xff] }
 0x357   : > { %v988_v61 = vrot.slane %v291_v26, 7 }
 0x358   : > { %vm866_vm14 = vcmp.eq.s32.totalorder %v1637_v0, %v865_v28  ;;  %vm867_vm15 = vcmp.eq.s32.totalorder %v1640_v1, %v865_v28  ;;  %v830_v0 = vsel %vm829_vm3, %v827_v24, %v828_v29  ;;  %v1058_v24 = vadd.f32 %v1057_v22, %v1056_v20 }
 0x359   : > { %vm868_vm1 = vmand %vm866_vm14, %vm1623_vm0  ;;  %v831_v39 = vrot.slane %v830_v0, 1 }
 0x35a   : > { %vm869_vm2 = vmand %vm867_vm15, %vm1623_vm0  ;;  %v870_v62 = vsel %vm868_vm1, %v1604_v11, 4294967295  ;;  %v1059_v28 = vrot.slane %v1058_v24, 1 }
 0x35b   : > { %v871_v31 = vsel %vm869_vm2, %v1604_v11, 4294967295  ;;  %v872_v32 = vrot.slane %v870_v62, 4  ;;  %vm832_vm9 = vcmp.lt.s32.totalorder %v830_v0, %v831_v39 }
 0x35c   : > { %v881_v33 = vrot.slane %v871_v31, 4  ;;  %v833_v46 = vsel %vm832_vm9, %v830_v0, %v831_v39  ;;  %v1060_v36 = vadd.f32 %v1059_v28, %v1058_v24 }
 0x35d   : > { %vm873_vm6 = vcmp.gt.s32.totalorder %v870_v62, %v872_v32 }
 0x35e   : > { %v874_v1 = vsel %vm873_vm6, %v870_v62, %v872_v32  ;;  %vm882_vm7 = vcmp.gt.s32.totalorder %v871_v31, %v881_v33  ;;  %v1065_v62 = vrot.slane %v1064_v25, 1  ;;  %v989_v32 = vrot.slane %v292_v27, 7 }
 0x35f   : > { %v875_v37 = vrot.slane %v874_v1, 2  ;;  %v883_v57 = vsel %vm882_vm7, %v871_v31, %v881_v33  ;;  %v994_v33 = vrot.slane %v291_v26, 3  ;;  %1510 = vlog2.f32 %v1060_v36 }
 0x360   : > { %v884_v38 = vrot.slane %v883_v57, 2  ;;  %v1066_v39 = vadd.f32 %v1065_v62, %v1064_v25  ;;  %vm1020_vm7 = vcmask 1043456  }
 0x361   : > { %vm876_vm0 = vcmp.gt.s32.totalorder %v874_v1, %v875_v37 }
 0x362   : > { %v877_v41 = vsel %vm876_vm0, %v874_v1, %v875_v37  ;;  %vm885_vm8 = vcmp.gt.s32.totalorder %v883_v57, %v884_v38  ;;  %v995_v1 = vrot.slane %v292_v27, 3  ;;  %1512 = vlog2.f32 %v1066_v39 }
 0x363   : > { %v878_v42 = vrot.slane %v877_v41, 1  ;;  %v886_v43 = vsel %vm885_vm8, %v883_v57, %v884_v38 }
 0x364   : > { %v887_v44 = vrot.slane %v886_v43, 1 }
 0x365   : > { %vm879_vm11 = vcmp.gt.s32.totalorder %v877_v41, %v878_v42 }
 0x366   : > { %vm888_vm12 = vcmp.gt.s32.totalorder %v886_v43, %v887_v44  ;;  %v880_v45 = vsel %vm879_vm11, %v877_v41, %v878_v42  ;;  %vm1118_vm11 = vcmask 1041408  }
 0x367   : > { %v889_v14 = vsel %vm888_vm12, %v886_v43, %v887_v44  ;;  %vm890_vm13 = vcmp.ge.s32.totalorder %v880_v45, 0 }
 0x368   : > { %vm891_vm14 = vcmp.ge.s32.totalorder %v889_v14, 0  ;;  %v892_v48 = vsel %vm890_vm13, %v880_v45, %v833_v46  ;;  %v894_v29 = vsel %vm890_vm13, 1.0, %v1823_v16 }
 0x369   : > { %v893_v49 = vsel %vm891_vm14, %v889_v14, %v842_v47  ;;  %vm896_vm15 = vcmp.eq.s32.totalorder %v1604_v11, %v892_v48  ;;  %v895_v31 = vsel %vm891_vm14, 1.0, %v1825_v30  ;;  %v1511_v6 = vpop.eup %1510 }
 0x36a   : > { %vm897_vm1 = vcmp.eq.s32.totalorder %v1604_v11, %v893_v49  ;;  %vm977_vm2 = vcmp.lt.f32.partialorder %v895_v31, 0.5  ;;  %v1068_v19 = vmul.f32 0.6931472, %v1511_v6 }
 0x36b   : > { %1299 = vmatprep.subr.msk.mxu0 %vm897_vm1, %v1544_v7 }
 0x36c   : > { %1300 = vmatpush1.msk.msra.mxu0 %vm896_vm15, %v1544_v7  ;;  %v1513_v10 = vpop.eup %1512 }
 0x36d   : > { %1301 = vmatmul.mubr.msk.f32.vlgmr.msra.gmra.mrb[2].mxu0 %vm364_vm4, %v288_v5  ;;  %vm976_vm4 = vcmp.lt.f32.partialorder %v894_v29, 0.5  ;;  %v1070_v22 = vmul.f32 0.6931472, %v1513_v10  ;;  %v1071_v29 = vadd.f32 %v1068_v19, %v1860_v3 }
 0x3aa   : > { %v700_v50 = vpop.f32.mrb[0].mxu1 }
 0x3ab   : > { %v1854_v51 = vpop.f32.mrb[1].mxu1 }
 0x440   : > { %v971_v0 = vpop.f32.mrb[2].mxu0 }
 0x441   : > { %v978_v37 = vsel %vm976_vm4, 0.0, %v971_v0  ;;  %v992_v57 = vsub.f32 %v971_v0, %v988_v61  ;;  %v973_v38 = vpop.f32.mrb[3].mxu0 }
 0x442   : > { %v980_v40 = vadd.f32 0.5, %v978_v37  ;;  %v979_v41 = vsel %vm977_vm2, 0.0, %v973_v38  ;;  %v993_v42 = vsub.f32 %v973_v38, %v989_v32  ;;  %v1072_v32 = vadd.f32 %v1070_v22, %v1862_v4 }
 0x443   : > { %v981_v16 = vadd.f32 0.5, %v979_v41  ;;  %v998_v43 = vmul.f32 %v994_v33, %v992_v57 }
 0x444   : > { %v1475_v44 = vtrunc.f32 %v980_v40  ;;  %v999_v45 = vmul.f32 %v995_v1, %v993_v42 }
 0x445   : > { %v1477_v30 = vtrunc.f32 %v981_v16  ;;  %v1002_v14 = vrot.slane %v998_v43, 1 }
 0x446   : > { %v1476_v46 = vcvt.f32.s32 %v1475_v44  ;;  %v1003_v47 = vrot.slane %v999_v45, 1 }
 0x447   : > { %v1878_v48 = vcvt.f32.s32 %v1477_v30  ;;  %v1006_v49 = vsub.f32 %v700_v50, %v1002_v14 }
 0x448   : > { %v1076_v5 = vrot.slane %v1476_v46, %v1608_v13  ;;  %v1007_v7 = vsub.f32 %v1854_v51, %v1003_v47  ;;  %vm984_vm8 = vcmp.gt.s32.totalorder %v1476_v46, 0 }
 0x449   : > { %v1080_v52 = vrot.slane %v1878_v48, %v1608_v13  ;;  %v1008_v53 = vand.u32 2147483647, %v1006_v49  ;;  %v1012_v54 = vmul.f32 0.5, %v1006_v49  ;;  %v1304_v39 = vsel %vm984_vm8, 1.0, %v1543_v17 }
 0x44a   : > { %vm1081_vm3 = vcmp.eq.s32.totalorder %v1604_v11, %v1076_v5  ;;  %v1009_v51 = vand.u32 2147483647, %v1007_v7  ;;  %v1013_v63 = vmul.f32 0.5, %v1007_v7  ;;  %vm985_vm9 = vcmp.gt.s32.totalorder %v1878_v48, 0 }
 0x44b   : > { %v1083_v55 = vsel %vm1081_vm3, %v1841_v34, 0.0  ;;  %vm1082_vm5 = vcmp.eq.s32.totalorder %v1604_v11, %v1080_v52  ;;  %vm1010_vm6 = vcmp.lt.f32.partialorder %v1008_v53, 1.0  ;;  %v1014_v58 = vmul.f32 %v1012_v54, %v1006_v49 }
 0x44c   : > { %v1085_v56 = vrot.slane %v1083_v55, 4  ;;  %v1084_v50 = vsel %vm1082_vm5, %v1843_v35, 0.0  ;;  %v1302_v59 = vadd.f32 -0.5, %v1008_v53  ;;  %vm1011_vm0 = vcmp.lt.f32.partialorder %v1009_v51, 1.0 }
 0x44d   : > { %v1091_v60 = vrot.slane %v1084_v50, 4  ;;  %v1015_v34 = vmul.f32 %v1013_v63, %v1007_v7  ;;  %v1303_v15 = vadd.f32 -0.5, %v1009_v51  ;;  %v1111_v42 = vrot.slane %v1304_v39, 6 }
 0x44e   : > { %v1086_v2 = vadd.f32 %v1085_v56, %v1083_v55  ;;  %v1018_v13 = vsel %vm1010_vm6, %v1014_v58, %v1302_v59  ;;  %v1305_v16 = vsel %vm985_vm9, 1.0, %v1543_v17 }
 0x44f   : > { %v1092_v8 = vadd.f32 %v1091_v60, %v1084_v50  ;;  %v1021_v9 = vsel %vm1020_vm7, %v1018_v13, 0.0  ;;  %v1019_v21 = vsel %vm1011_vm0, %v1015_v34, %v1303_v15  ;;  %v1112_v14 = vrot.slane %v1305_v16, 6 }
 0x450   : > { %v1087_v11 = vrot.slane %v1086_v2, 2  ;;  %v1022_v12 = vrot.slane %v1021_v9, 4  ;;  %v1028_v24 = vsel %vm1020_vm7, %v1019_v21, 0.0 }
 0x451   : > { %v1093_v18 = vrot.slane %v1092_v8, 2  ;;  %v1029_v27 = vrot.slane %v1028_v24, 4 }
 0x452   : > { %v1088_v35 = vadd.f32 %v1087_v11, %v1086_v2  ;;  %v1023_v20 = vadd.f32 %v1022_v12, %v1021_v9 }
 0x453   : > { %v1094_v23 = vadd.f32 %v1093_v18, %v1092_v8  ;;  %v1030_v31 = vadd.f32 %v1029_v27, %v1028_v24 }
 0x454   : > { %v1089_v25 = vrot.slane %v1088_v35, 1  ;;  %v1024_v26 = vrot.slane %v1023_v20, 2 }
 0x455   : > { %v1095_v28 = vrot.slane %v1094_v23, 1  ;;  %v1031_v36 = vrot.slane %v1030_v31, 2 }
 0x456   : > { %v1090_v61 = vadd.f32 %v1089_v25, %v1088_v35  ;;  %v1025_v62 = vadd.f32 %v1024_v26, %v1023_v20 }
 0x457   : > { %v1096_v33 = vadd.f32 %v1095_v28, %v1094_v23  ;;  %v1032_v38 = vadd.f32 %v1031_v36, %v1030_v31 }
 0x458   : > { %v1097_v0 = vsub.f32 %v1071_v29, %v1090_v61  ;;  %v1026_v1 = vrot.slane %v1025_v62, 1 }
 0x459   : > { %v1098_v37 = vsub.f32 %v1072_v32, %v1096_v33  ;;  %v1033_v3 = vrot.slane %v1032_v38, 1 }
 0x45a   : > { %v1027_v57 = vadd.f32 %v1026_v1, %v1025_v62 }
 0x45b   : > { %v1034_v4 = vadd.f32 %v1033_v3, %v1032_v38 }
 0x45c   : > { %v1035_v40 = vsel %vm984_vm8, %v1027_v57, 0.0 }
 0x45d   : > { %v1105_v41 = vrot.slane %v1035_v40, 7  ;;  %v1036_v45 = vsel %vm985_vm9, %v1034_v4, 0.0 }
 0x45e   : > { %v1106_v30 = vrot.slane %v1036_v45, 7 }
 0x45f   : > { %v1116_v43 = vsel %vm1115_vm10, %v1097_v0, %v1105_v41 }
 0x460   : > { %v1119_v44 = vsel %vm1118_vm11, %v1116_v43, %v1111_v42  ;;  %v1117_v46 = vsel %vm1115_vm10, %v1098_v37, %v1106_v30 }
 0x461   : > { %v1120_v47 = vsel %vm1118_vm11, %v1117_v46, %v1112_v14 }
 0x462   : > { %v1123_v48 = vcombine.low %v1119_v44, %v1120_v47 }
 0x464   : > { %1125 = vst [vmem:[%s285_s8] sm:$0x77] %v1123_v48 }
 0x465 PF: > { %s22_s26 = sadd.s32 1, %s1534_s26  }
 0x466   : > { %p19_p9 = scmp.ge.s32.totalorder %s22_s26, 4  }
 0x468   :  { %21 = sbr.rel (!%p19_p9) target bundleno = 16 (0x10), region = 79 }

</bundles_post_ra>
